<compile_context>
chip_gen: v5e
topology: v5e:2x2
jax: 0.10.0
libtpu: 0.0.40
codegen_flags: <defaults>
</compile_context>

<pallas_src>
import functools

import jax
import jax.numpy as jnp
from jax.experimental import pallas as pl
from jax.experimental.pallas import tpu as pltpu

EPS = 1e-6


def _sublayer_connection_kernel(x_ref, a2_ref, b2_ref, w_ref, bias_ref, o_ref):
    """out = x + (LayerNorm(x) @ W + bias)   (dropout = identity, eval mode)."""
    x = x_ref[...].astype(jnp.float32)          # (tm, D)  keep LN math in f32
    a2 = a2_ref[...].astype(jnp.float32)        # (1, D)
    b2 = b2_ref[...].astype(jnp.float32)        # (1, D)
    bias = bias_ref[...].astype(jnp.float32)    # (1, D)

    d = x.shape[-1]

    # --- LayerNorm (PyTorch module semantics: unbiased std, eps added to std) ---
    mean = jnp.mean(x, axis=-1, keepdims=True)                          # (tm, 1)
    centered = x - mean
    var_unb = jnp.sum(centered * centered, axis=-1, keepdims=True) * (1.0 / (d - 1))
    std = jnp.sqrt(var_unb)
    inv_std = pl.reciprocal(std + EPS, approx=True)                     # EUP slot
    normed = a2 * (centered * inv_std) + b2                             # (tm, D)

    # --- sublayer: dense D->D projection; bf16 into the MXU, f32 accumulate ---
    sub = jnp.dot(normed.astype(jnp.bfloat16), w_ref[...],
                  preferred_element_type=jnp.float32) + bias            # (tm, D)

    # --- dropout (inference: identity) + residual add ---
    o_ref[...] = (x + sub).astype(o_ref.dtype)


@functools.partial(jax.jit, static_argnames=("tm",))
def sublayer_connection(x, a2, b2, w, bias, *, tm=512):
    """x: (B, S, D); a2, b2, bias: (D,); w: (D, D).  Returns (B, S, D)."""
    B, S, D = x.shape
    rows = B * S

    # Effective row tile: large by default, shrunk (to a multiple of 8) for
    # tiny inputs so we don't over-pad; rows are padded up to a tile multiple
    # instead of asserting divisibility.
    rows8 = ((rows + 7) // 8) * 8
    tm_eff = max(8, (min(tm, rows8) // 8) * 8)
    rows_p = ((rows + tm_eff - 1) // tm_eff) * tm_eff
    grid = rows_p // tm_eff  # for production sizes keep >=2 so both v7x TCs work

    x2d = x.reshape(rows, D)
    if rows_p != rows:
        x2d = jnp.pad(x2d, ((0, rows_p - rows), (0, 0)))

    a2_ = a2.reshape(1, D)
    b2_ = b2.reshape(1, D)
    bias_ = bias.reshape(1, D)
    w_bf16 = w.astype(jnp.bfloat16)   # halve W's DMA/VMEM; f32 accumulate in-kernel

    out = pl.pallas_call(
        _sublayer_connection_kernel,
        out_shape=jax.ShapeDtypeStruct((rows_p, D), x.dtype),
        grid_spec=pltpu.PrefetchScalarGridSpec(
            num_scalar_prefetch=0,
            grid=(grid,),
            in_specs=[
                pl.BlockSpec((tm_eff, D), lambda i: (i, 0)),   # x tile
                pl.BlockSpec((1, D), lambda i: (0, 0)),        # a_2
                pl.BlockSpec((1, D), lambda i: (0, 0)),        # b_2
                pl.BlockSpec((D, D), lambda i: (0, 0)),        # W (bf16)
                pl.BlockSpec((1, D), lambda i: (0, 0)),        # bias
            ],
            out_specs=pl.BlockSpec((tm_eff, D), lambda i: (i, 0)),
        ),
        compiler_params=pltpu.CompilerParams(
            dimension_semantics=("parallel",),
            vmem_limit_bytes=32 * 1024 * 1024,   # ample headroom on v5e/v6e/v7x
        ),
    )(x2d, a2_, b2_, w_bf16, bias_)

    return out[:rows].reshape(B, S, D)


def _reference(x, a2, b2, w, bias):
    """Pure-JAX reference mirroring the PyTorch module (eval mode, f32 matmul)."""
    x32 = x.astype(jnp.float32)
    mean = jnp.mean(x32, axis=-1, keepdims=True)
    centered = x32 - mean
    d = x.shape[-1]
    std = jnp.sqrt(jnp.sum(centered**2, axis=-1, keepdims=True) / (d - 1))
    normed = a2 * centered / (std + EPS) + b2
    sub = normed @ w.astype(jnp.float32) + bias
    return (x32 + sub).astype(x.dtype)


if __name__ == "__main__":
    D = 128   # D = 128 keeps the lane axis dense

    key = jax.random.PRNGKey(0)
    kx, kw, kb, kx2 = jax.random.split(key, 4)

    # LayerNorm params (as in __init__: ones / zeros)
    a2 = jnp.ones((D,), jnp.float32)
    b2 = jnp.zeros((D,), jnp.float32)

    # Deterministic synthetic sublayer (dense D->D) parameters
    w = jax.random.normal(kw, (D, D), dtype=jnp.float32) * (1.0 / jnp.sqrt(D))
    bias = jax.random.normal(kb, (D,), dtype=jnp.float32) * 0.01

    # Case 1: small, evenly-tiled shape (B*S = 16 rows).
    x = jax.random.normal(kx, (2, 8, D), dtype=jnp.float32)
    out = jax.block_until_ready(sublayer_connection(x, a2, b2, w, bias))
    ref = _reference(x, a2, b2, w, bias)
    assert out.shape == x.shape
    # bf16 MXU inputs + approx reciprocal => loosened tolerance vs f32 reference.
    assert jnp.allclose(out, ref, atol=5e-2, rtol=5e-2), "mismatch vs reference (case 1)"

    # Case 2: B*S = 15 rows (not a tile multiple) -> exercises the padding path.
    x2 = jax.random.normal(kx2, (3, 5, D), dtype=jnp.float32)
    out2 = jax.block_until_ready(sublayer_connection(x2, a2, b2, w, bias))
    ref2 = _reference(x2, a2, b2, w, bias)
    assert out2.shape == x2.shape
    assert jnp.allclose(out2, ref2, atol=5e-2, rtol=5e-2), "mismatch vs reference (case 2)"

    print("KERNEL_OK")
</pallas_src>

<mosaic_0001>
module attributes {stable_mosaic.version = 11 : i64} {
  func.func @_sublayer_connection_kernel(%arg0: i32, %arg1: memref<16x128xf32, #tpu.memory_space<vmem>>, %arg2: memref<1x128xf32, #tpu.memory_space<vmem>>, %arg3: memref<1x128xf32, #tpu.memory_space<vmem>>, %arg4: memref<128x128xbf16, #tpu.memory_space<vmem>>, %arg5: memref<1x128xf32, #tpu.memory_space<vmem>>, %arg6: memref<16x128xf32, #tpu.memory_space<vmem>>) attributes {dimension_semantics = [#tpu.dimension_semantics<parallel>], iteration_bounds = array<i64: 1>, scalar_prefetch = 0 : i64, scratch_operands = 0 : i64, tpu.core_type = #tpu.core_type<tc>, window_params = [{transform_indices = @transform_0, window_bounds = array<i64: 16, 128>}, {pipeline_mode = #tpu.pipeline_mode<synchronous>, transform_indices = @transform_1, window_bounds = array<i64: 1, 128>}, {pipeline_mode = #tpu.pipeline_mode<synchronous>, transform_indices = @transform_2, window_bounds = array<i64: 1, 128>}, {pipeline_mode = #tpu.pipeline_mode<synchronous>, transform_indices = @transform_3, window_bounds = array<i64: 128, 128>}, {pipeline_mode = #tpu.pipeline_mode<synchronous>, transform_indices = @transform_4, window_bounds = array<i64: 1, 128>}, {transform_indices = @transform_5, window_bounds = array<i64: 16, 128>}]} {
    %c0 = arith.constant 0 : index
    %c0_0 = arith.constant 0 : index
    %0 = vector.load %arg1[%c0, %c0_0] : memref<16x128xf32, #tpu.memory_space<vmem>>, vector<16x128xf32>
    %c0_1 = arith.constant 0 : index
    %c0_2 = arith.constant 0 : index
    %1 = vector.load %arg2[%c0_1, %c0_2] : memref<1x128xf32, #tpu.memory_space<vmem>>, vector<1x128xf32>
    %c0_3 = arith.constant 0 : index
    %c0_4 = arith.constant 0 : index
    %2 = vector.load %arg3[%c0_3, %c0_4] : memref<1x128xf32, #tpu.memory_space<vmem>>, vector<1x128xf32>
    %c0_5 = arith.constant 0 : index
    %c0_6 = arith.constant 0 : index
    %3 = vector.load %arg5[%c0_5, %c0_6] : memref<1x128xf32, #tpu.memory_space<vmem>>, vector<1x128xf32>
    %cst = arith.constant dense<0.000000e+00> : vector<16xf32>
    %4 = vector.multi_reduction <add>, %0, %cst [1] : vector<16x128xf32> to vector<16xf32>
    %5 = vector.shape_cast %4 : vector<16xf32> to vector<16x1xf32>
    %cst_7 = arith.constant 1.280000e+02 : f32
    %6 = vector.broadcast %cst_7 : f32 to vector<16x1xf32>
    %7 = arith.divf %5, %6 : vector<16x1xf32>
    %8 = vector.broadcast %7 : vector<16x1xf32> to vector<16x128xf32>
    %9 = arith.subf %0, %8 : vector<16x128xf32>
    %10 = arith.mulf %9, %9 : vector<16x128xf32>
    %cst_8 = arith.constant dense<0.000000e+00> : vector<16xf32>
    %11 = vector.multi_reduction <add>, %10, %cst_8 [1] : vector<16x128xf32> to vector<16xf32>
    %12 = vector.shape_cast %11 : vector<16xf32> to vector<16x1xf32>
    %cst_9 = arith.constant 0.00787401571 : f32
    %13 = vector.broadcast %cst_9 : f32 to vector<16x1xf32>
    %14 = arith.mulf %12, %13 : vector<16x1xf32>
    %15 = math.sqrt %14 : vector<16x1xf32>
    %cst_10 = arith.constant 9.99999997E-7 : f32
    %16 = vector.broadcast %cst_10 : f32 to vector<16x1xf32>
    %17 = arith.addf %15, %16 : vector<16x1xf32>
    %18 = tpu.reciprocal %17 {approx = true} : vector<16x1xf32> -> vector<16x1xf32>
    %19 = vector.broadcast %18 : vector<16x1xf32> to vector<16x128xf32>
    %20 = arith.mulf %9, %19 : vector<16x128xf32>
    %21 = vector.broadcast %1 : vector<1x128xf32> to vector<16x128xf32>
    %22 = arith.mulf %21, %20 : vector<16x128xf32>
    %23 = vector.broadcast %2 : vector<1x128xf32> to vector<16x128xf32>
    %24 = arith.addf %22, %23 : vector<16x128xf32>
    %25 = arith.truncf %24 : vector<16x128xf32> to vector<16x128xbf16>
    %c0_11 = arith.constant 0 : index
    %c0_12 = arith.constant 0 : index
    %26 = vector.load %arg4[%c0_11, %c0_12] : memref<128x128xbf16, #tpu.memory_space<vmem>>, vector<128x128xbf16>
    %cst_13 = arith.constant dense<0.000000e+00> : vector<16x128xf32>
    %27 = tpu.matmul %25, %26, %cst_13 {dimension_numbers = #tpu.dot_dimension_numbers<[1], [0], [0], [1], [0, 0, 1, 1], [], []>} : vector<16x128xbf16>, vector<128x128xbf16>, vector<16x128xf32> -> vector<16x128xf32>
    %28 = vector.broadcast %3 : vector<1x128xf32> to vector<16x128xf32>
    %29 = arith.addf %27, %28 : vector<16x128xf32>
    %30 = arith.addf %0, %29 : vector<16x128xf32>
    %c0_14 = arith.constant 0 : index
    %c0_15 = arith.constant 0 : index
    %31 = vector.load %arg6[%c0_14, %c0_15] : memref<16x128xf32, #tpu.memory_space<vmem>>, vector<16x128xf32>
    tpu.vector_store %arg6[%c0_14, %c0_15], %30 {strides = array<i32>} : memref<16x128xf32, #tpu.memory_space<vmem>>, vector<16x128xf32>,
    return
  }
  func.func @transform_0(%arg0: i32) -> (i32, i32) {
    %c0_i32 = arith.constant 0 : i32
    %c0_i32_0 = arith.constant 0 : i32
    return %arg0, %c0_i32 : i32, i32
  }
  func.func @transform_1(%arg0: i32) -> (i32, i32) {
    %c0_i32 = arith.constant 0 : i32
    %c0_i32_0 = arith.constant 0 : i32
    %c0_i32_1 = arith.constant 0 : i32
    return %c0_i32, %c0_i32_0 : i32, i32
  }
  func.func @transform_2(%arg0: i32) -> (i32, i32) {
    %c0_i32 = arith.constant 0 : i32
    %c0_i32_0 = arith.constant 0 : i32
    %c0_i32_1 = arith.constant 0 : i32
    return %c0_i32, %c0_i32_0 : i32, i32
  }
  func.func @transform_3(%arg0: i32) -> (i32, i32) {
    %c0_i32 = arith.constant 0 : i32
    %c0_i32_0 = arith.constant 0 : i32
    %c0_i32_1 = arith.constant 0 : i32
    return %c0_i32, %c0_i32_0 : i32, i32
  }
  func.func @transform_4(%arg0: i32) -> (i32, i32) {
    %c0_i32 = arith.constant 0 : i32
    %c0_i32_0 = arith.constant 0 : i32
    %c0_i32_1 = arith.constant 0 : i32
    return %c0_i32, %c0_i32_0 : i32, i32
  }
  func.func @transform_5(%arg0: i32) -> (i32, i32) {
    %c0_i32 = arith.constant 0 : i32
    %c0_i32_0 = arith.constant 0 : i32
    return %arg0, %c0_i32 : i32, i32
  }
}

</mosaic_0001>

<bundles_post_ra>
// kernel: sublayer_connection.1
= control target key start
LH: loop header
LB: loop body
LE: loop exit
PB: predicated region body
PF: predicated region fallthrough
CT: control target
= control target key end

     0   :  { %s362_s0 = inlined_call_operand.vmem [shape: f32[16,128], index: 0, kind: input, shape index: {}]   ;;  %s363_s1 = inlined_call_operand.vmem [shape: f32[1,128], index: 1, kind: input, shape index: {}]   ;;  %s364_s2 = inlined_call_operand.vmem [shape: f32[1,128], index: 2, kind: input, shape index: {}]   ;;  %s365_s3 = inlined_call_operand.vmem [shape: bf16[128,128], index: 3, kind: input, shape index: {}]   ;;  %s366_s4 = inlined_call_operand.vmem [shape: f32[1,128], index: 4, kind: input, shape index: {}]   ;;  %s367_s5 = inlined_call_operand.hbm [shape: f32[16,128], index: 5, kind: output, shape index: {}]  }
   0x1   :  { %v313_v0 = vld [vmem:[%s362_s0] sm:$0xff] }
   0x2   :  { %26 = vadd.xlane.f32.xlu0 %v313_v0 }
   0x3   :  { %10 = vsyncpa [#allocation3], 0  ;;  %v319_v1 = vld [vmem:[%s362_s0 + $0x8] sm:$0xff]  ;;  %v276_v2 = vmov 128.0   ;;  %v232_v17 = vld [vmem:[%s365_s3 + $0x38] sm:$0xff]  ;;  %s278_s20 = smov 128  }
   0x4   :  { %240 = vrcp.f32 %v276_v2  ;;  %157 = vmatpush.bf16.msra.mxu0 %v232_v17  ;;  %v231_v18 = vld [vmem:[%s365_s3 + $0x30] sm:$0xff]  ;;  %v230_v19 = vld [vmem:[%s365_s3 + $0x28] sm:$0xff]  ;;  %v229_v20 = vld [vmem:[%s365_s3 + $0x20] sm:$0xff] }
   0x5   :  { %v228_v21 = vld [vmem:[%s365_s3 + $0x18] sm:$0xff]  ;;  %v227_v24 = vld [vmem:[%s365_s3 + $0x10] sm:$0xff]  ;;  %v226_v25 = vld [vmem:[%s365_s3 + $0x8] sm:$0xff] }
   0x6   :  { %v225_v30 = vld [vmem:[%s365_s3] sm:$0xff] }
   0x7   :  { %v237_v53 = vld [vmem:[%s363_s1] ss:$0 sm:$0xff]  ;;  %s277_s1 = smov [#allocation2]  }
   0x8   :  { %158 = vmatpush.bf16.msra.mxu0 %v231_v18  ;;  %v238_v57 = vld [vmem:[%s364_s2] ss:$0 sm:$0xff]  ;;  %s179_s17 = sshll.u32 %s277_s1, 4  ;;  %s181_s2 = sshll.u32 %s367_s5, 4  ;;  %s180_s17 = int_to_ptr.vmem [resolvable:$true] %s179_s17  ;;  %s182_s2 = int_to_ptr.hbm [resolvable:$true] %s181_s2 }
   0x9   :  { %v239_v62 = vld [vmem:[%s366_s4] ss:$0 sm:$0xff]  ;;  %s279_s4 = smov 8  }
   0xa   :  { %28 = vadd.xlane.f32.xlu0 %v319_v1  ;;  %v241_v3 = vpop.eup %240 }
   0xb   :  { %v31_v4 = vmul.f32 128.0, %v241_v3  ;;  %vm35_vm0 = vweird.f32 %v241_v3 }
   0xc   :  { %159 = vmatpush.bf16.msra.mxu0 %v230_v19 }
   0xd   :  { %v32_v5 = vsub.f32 1.0, %v31_v4 }
   0xf   :  { %v33_v6 = vmul.f32 %v241_v3, %v32_v5 }
  0x10   :  { %160 = vmatpush.bf16.msra.mxu0 %v229_v20 }
  0x11   :  { %v34_v7 = vadd.f32 %v241_v3, %v33_v6 }
  0x13   :  { %v36_v8 = vsel %vm35_vm0, %v241_v3, %v34_v7 }
  0x14   :  { %161 = vmatpush.bf16.msra.mxu0 %v228_v21 }
  0x18   :  { %162 = vmatpush.bf16.msra.mxu0 %v227_v24 }
  0x1c   :  { %163 = vmatpush.bf16.msra.mxu0 %v226_v25 }
  0x20   :  { %164 = vmatpush.bf16.msra.mxu0 %v225_v30 }
  0x75   :  { %v27_v9 = vpop.xlane.xlu0 %26 }
  0x76   :  { %v37_v10 = vmul.f32 %v36_v8, %v27_v9 }
  0x78   :  { %v39_v11 = vsub.f32 %v313_v0, %v37_v10 }
  0x7a   :  { %v41_v12 = vmul.f32 %v39_v11, %v39_v11 }
  0x7c   :  { %43 = vadd.xlane.f32.xlu1 %v41_v12 }
  0x7d   :  { %v29_v13 = vpop.xlane.xlu0 %28 }
  0x7e   :  { %v38_v14 = vmul.f32 %v36_v8, %v29_v13 }
  0x80   :  { %v40_v15 = vsub.f32 %v319_v1, %v38_v14 }
  0x82   :  { %v42_v16 = vmul.f32 %v40_v15, %v40_v15 }
  0x84   :  { %45 = vadd.xlane.f32.xlu1 %v42_v16 }
  0xef   :  { %v44_v22 = vpop.xlane.xlu1 %43 }
  0xf0   :  { %v47_v23 = vmul.f32 0.007874016, %v44_v22 }
  0xf2   :  { %242 = vrsqrt.f32 %v47_v23  ;;  %vm56_vm1 = vcmp.eq.f32.partialorder %v47_v23, inf  ;;  %v59_v39 = vand.u32 2147483648, %v47_v23  ;;  %vm58_vm2 = vcmp.eq.f32.partialorder %v47_v23, 0.0 }
  0xf7   :  { %v46_v26 = vpop.xlane.xlu1 %45 }
  0xf8   :  { %v243_v27 = vpop.eup %242  ;;  %v48_v28 = vmul.f32 0.007874016, %v46_v26 }
  0xf9   :  { %v50_v29 = vmul.f32 %v243_v27, %v47_v23 }
  0xfa   :  { %244 = vrsqrt.f32 %v48_v28  ;;  %vm68_vm3 = vcmp.eq.f32.partialorder %v48_v28, inf  ;;  %v71_v47 = vand.u32 2147483648, %v48_v28  ;;  %vm70_vm4 = vcmp.eq.f32.partialorder %v48_v28, 0.0 }
  0xfb   :  { %v51_v31 = vmul.f32 %v243_v27, %v50_v29 }
  0xfd   :  { %v52_v32 = vmul.f32 0.5, %v51_v31 }
  0xff   :  { %v53_v33 = vsub.f32 1.5, %v52_v32 }
 0x100   :  { %v245_v34 = vpop.eup %244 }
 0x101   :  { %v62_v35 = vmul.f32 %v245_v34, %v48_v28  ;;  %v54_v36 = vmul.f32 %v243_v27, %v53_v33 }
 0x103   :  { %v63_v37 = vmul.f32 %v245_v34, %v62_v35  ;;  %v55_v38 = vmul.f32 %v54_v36, %v47_v23 }
 0x105   :  { %v57_v40 = vsel %vm56_vm1, %v47_v23, %v55_v38  ;;  %v64_v41 = vmul.f32 0.5, %v63_v37 }
 0x106   :  { %v60_v42 = vsel %vm58_vm2, %v59_v39, %v57_v40 }
 0x107   :  { %v65_v43 = vsub.f32 1.5, %v64_v41  ;;  %v73_v44 = vadd.f32 1e-06, %v60_v42 }
 0x109   :  { %v66_v45 = vmul.f32 %v245_v34, %v65_v43  ;;  %246 = vrcp.f32 %v73_v44 }
 0x10b   :  { %v67_v46 = vmul.f32 %v66_v45, %v48_v28 }
 0x10d   :  { %v69_v48 = vsel %vm68_vm3, %v48_v28, %v67_v46 }
 0x10e   :  { %v72_v49 = vsel %vm70_vm4, %v71_v47, %v69_v48 }
 0x10f   :  { %v74_v50 = vadd.f32 1e-06, %v72_v49  ;;  %v247_v51 = vpop.eup %246 }
 0x110   :  { %v77_v52 = vmul.f32 %v247_v51, %v39_v11 }
 0x111   :  { %248 = vrcp.f32 %v74_v50 }
 0x112   :  { %v82_v56 = vmul.f32 %v237_v53, %v77_v52 }
 0x114   :  { %v87_v59 = vadd.f32 %v238_v57, %v82_v56 }
 0x117   :  { %v249_v54 = vpop.eup %248 }
 0x118   :  { %v78_v55 = vmul.f32 %v249_v54, %v40_v15 }
 0x11a   :  { %v83_v58 = vmul.f32 %v237_v53, %v78_v55 }
 0x11c   :  { %v88_v60 = vadd.f32 %v238_v57, %v83_v58 }
 0x11e   :  { %v89_v61 = vpack.c.bf16 %v88_v60, %v87_v59 }
 0x120   :  { %165 = vmatmul.bf16.vlgmr.msra.gmra.mxu0 %v89_v61 }
 0x19d   :  { %v166_v63 = vpop.f32.mrf.mxu0 }
 0x19e   :  { %v167_v2 = vadd.f32 %v239_v62, %v166_v63 }
 0x1a0   :  { %v171_v3 = vadd.f32 %v167_v2, %v313_v0 }
 0x1a2   :  { %173 = vst [vmem:[#allocation2] sm:$0xff] %v171_v3 }
 0x1a5   :  { %v168_v4 = vpop.f32.mrf.mxu0 }
 0x1a6   :  { %v169_v5 = vadd.f32 %v239_v62, %v168_v4 }
 0x1a8   :  { %v172_v6 = vadd.f32 %v169_v5, %v319_v1 }
 0x1aa   :  { %174 = vst [vmem:[#allocation2 + $0x8] sm:$0xff] %v172_v6 }
 0x1ab   :  { %187 = dma.vmem_to_hbm [thread:$0]  %s180_s17, 256, %s182_s2, [#allocation3], %s278_s20, %s278_s20, %s279_s4  }
 0x1ac   :  { %274 = dma.done.wait [#allocation3], 256  }
 0x1ad   :  { %275 = vsyncadd [#allocation3], 4294967040 }
 0x1ae   :  { %192 = vsyncpa [#allocation3], 1 }

</bundles_post_ra>
